<compile_context>
chip_gen: v7x
topology: tpu7x:2x2x1
jax: 0.10.0
libtpu: 0.0.40
codegen_flags: <defaults>
</compile_context>

<pallas_src>
import functools

import numpy as np
import jax
import jax.numpy as jnp
from jax.experimental import pallas as pl
from jax.experimental.pallas import tpu as pltpu


def _render_kernel(trig_ref, rowcol_ref, pts_ref, o_ref, *, img_size):
    """Render one (batch, view) image.

    trig_ref  : (V, 4) f32 SMEM  -- [cos_az, sin_az, cos_el, sin_el] per view.
    rowcol_ref: (2, SS_pad) i32 VMEM -- pixel row / col index per output lane.
    pts_ref   : (N, 3) f32 VMEM  -- point coords, point axis on sublanes.
    o_ref     : (1, SS_pad) f32 VMEM -- lane-dense single-channel image row.
    """
    S = img_size
    v = pl.program_id(1)

    cos_az = trig_ref[v, 0]
    sin_az = trig_ref[v, 1]
    cos_el = trig_ref[v, 2]
    sin_el = trig_ref[v, 3]

    x = pts_ref[:, 0:1]          # (N, 1)
    y = pts_ref[:, 1:2]
    z = pts_ref[:, 2:3]

    # project_points: spherical rotation (SMEM scalars splat across lanes).
    x_rot = x * cos_az - z * sin_az
    z_rot = x * sin_az + z * cos_az
    y_rot = y * cos_el - z_rot * sin_el
    z_fin = y * sin_el + z_rot * cos_el

    # Per-(batch, view) depth normalization -> shading feature in [0.3, 1.0].
    z_min = jnp.min(z_fin, axis=0, keepdims=True)
    z_max = jnp.max(z_fin, axis=0, keepdims=True)
    feat = 0.3 + 0.7 * ((z_fin - z_min) / (z_max - z_min + 1e-06))     # (N, 1)

    # Axis-separable box test (exact equivalent of the 5x5 scatter):
    # px depends only on the x-offset, py only on the y-offset; the offsets are
    # (S-1)/(2S) < 1 pixel apart, so the attained pixel indices form the full
    # integer interval between the two endpoint offsets (-2/S and +2/S, which
    # are torch.linspace's exact endpoints).  .astype(int32) truncates toward
    # zero, matching torch .long(); the [0, S-1] validity clamp is implicit
    # because the row/col iotas only take values in [0, S-1].
    off = 2.0 / S
    px_lo = ((x_rot - off + 1.0) * 0.5 * (S - 1.0)).astype(jnp.int32)  # (N, 1)
    px_hi = ((x_rot + off + 1.0) * 0.5 * (S - 1.0)).astype(jnp.int32)
    py_lo = ((y_rot - off + 1.0) * 0.5 * (S - 1.0)).astype(jnp.int32)
    py_hi = ((y_rot + off + 1.0) * 0.5 * (S - 1.0)).astype(jnp.int32)

    row = rowcol_ref[0:1, :]     # (1, SS_pad) int32, broadcast over sublanes
    col = rowcol_ref[1:2, :]

    # ~9 VPU ops per (point, pixel): 4 compares + 3 ands + 1 select + 1 max.
    hit = (col >= px_lo) & (col <= px_hi) & (row >= py_lo) & (row <= py_hi)
    acc = jnp.where(hit, feat, 0.0)                         # (N, SS_pad)
    # Zero background + max == scatter_reduce('amax') since feat >= 0.3 > 0.
    o_ref[...] = jnp.max(acc, axis=0, keepdims=True)        # (1, SS_pad)


def point_cloud_render(points, *, img_size=16, num_views=6):
    """JAX/Pallas equivalent of PointCloudRenderer(img_size, num_views).forward."""
    assert num_views <= 6, "elevation table only defines 6 views"
    B, N, C = points.shape
    assert C == 3
    points = points.astype(jnp.float32)
    S = img_size
    SS = S * S
    SS_pad = ((SS + 127) // 128) * 128   # lane-dense, unmasked stores

    # Deterministic module "parameters" (angles) -> (V, 4) trig table in SMEM.
    az = np.linspace(0.0, 360.0, num_views + 1, dtype=np.float32)[:-1]
    el = np.array([0.0, 30.0, -30.0, 0.0, 0.0, 0.0], dtype=np.float32)[:num_views]
    az_rad = az * np.float32(np.pi) / np.float32(180.0)
    el_rad = el * np.float32(np.pi) / np.float32(180.0)
    trig = jnp.asarray(
        np.stack([np.cos(az_rad), np.sin(az_rad), np.cos(el_rad), np.sin(el_rad)],
                 axis=-1).astype(np.float32))                       # (V, 4)

    # Pixel row / col index per output lane (padded lanes marked -1; they are
    # sliced off in the wrapper, so their value never matters).
    lin = np.arange(SS_pad, dtype=np.int64)
    row = np.where(lin < SS, lin // S, -1).astype(np.int32)
    col = np.where(lin < SS, lin % S, -1).astype(np.int32)
    rowcol = jnp.asarray(np.stack([row, col], axis=0))               # (2, SS_pad)

    kernel = functools.partial(_render_kernel, img_size=S)

    # TODO(synk): for large N or S, add an 'arbitrary' grid axis over N-chunks
    # with a VMEM (1, SS_pad) max-accumulator and a z_min/z_max pre-pass (sized
    # for v7x's 64 MiB VMEM, with vmem_limit_bytes set explicitly).
    out = pl.pallas_call(
        kernel,
        out_shape=jax.ShapeDtypeStruct((B, num_views, 1, SS_pad), jnp.float32),
        grid=(B, num_views),
        in_specs=[
            pl.BlockSpec(memory_space=pltpu.MemorySpace.SMEM),        # trig table
            pl.BlockSpec((2, SS_pad), lambda b, v: (0, 0)),           # row/col iota
            pl.BlockSpec((None, N, 3), lambda b, v: (b, 0, 0)),       # points (resident over v)
        ],
        out_specs=pl.BlockSpec((None, None, 1, SS_pad), lambda b, v: (b, v, 0, 0)),
        compiler_params=pltpu.CompilerParams(
            dimension_semantics=("parallel", "parallel")),
    )(trig, rowcol, points)

    # Lane-dense kernel output -> (B, V, 3, H, W); all 3 channels share the
    # same shading feature (exactly as the torch reference expands it).
    imgs = out[:, :, :, :SS].reshape(B, num_views, 1, S, S)
    return jnp.broadcast_to(imgs, (B, num_views, 3, S, S))


if __name__ == "__main__":
    key = jax.random.PRNGKey(0)
    B, N, IMG, V = 2, 32, 16, 6
    points = jax.random.uniform(
        key, (B, N, 3), minval=-0.9, maxval=0.9, dtype=jnp.float32
    )
    out = point_cloud_render(points, img_size=IMG, num_views=V)
    out = jax.block_until_ready(out)
    assert out.shape == (B, V, 3, IMG, IMG), out.shape
    assert bool(jnp.isfinite(out).all())
    print("KERNEL_OK")
</pallas_src>

<mosaic_0001>
module attributes {stable_mosaic.version = 11 : i64} {
  func.func @_render_kernel(%arg0: i32, %arg1: i32, %arg2: memref<6x4xf32, #tpu.memory_space<smem>>, %arg3: memref<2x256xi32, #tpu.memory_space<vmem>>, %arg4: memref<1x32x3xf32, #tpu.memory_space<vmem>>, %arg5: memref<1x1x1x256xf32, #tpu.memory_space<vmem>>) attributes {dimension_semantics = [#tpu.dimension_semantics<parallel>, #tpu.dimension_semantics<parallel>], iteration_bounds = array<i64: 2, 6>, scalar_prefetch = 0 : i64, scratch_operands = 0 : i64, tpu.core_type = #tpu.core_type<tc>, window_params = [{transform_indices = @transform_0, window_bounds = array<i64: 6, 4>}, {pipeline_mode = #tpu.pipeline_mode<synchronous>, transform_indices = @transform_1, window_bounds = array<i64: 2, 256>}, {transform_indices = @transform_2, window_bounds = array<i64: 1, 32, 3>}, {transform_indices = @transform_3, window_bounds = array<i64: 1, 1, 1, 256>}]} {
    %0 = arith.index_cast %arg1 : i32 to index
    %c0 = arith.constant 0 : index
    %1 = memref.load %arg2[%0, %c0] : memref<6x4xf32, #tpu.memory_space<smem>>
    %2 = arith.index_cast %arg1 : i32 to index
    %c1 = arith.constant 1 : index
    %3 = memref.load %arg2[%2, %c1] : memref<6x4xf32, #tpu.memory_space<smem>>
    %4 = arith.index_cast %arg1 : i32 to index
    %c2 = arith.constant 2 : index
    %5 = memref.load %arg2[%4, %c2] : memref<6x4xf32, #tpu.memory_space<smem>>
    %6 = arith.index_cast %arg1 : i32 to index
    %c3 = arith.constant 3 : index
    %7 = memref.load %arg2[%6, %c3] : memref<6x4xf32, #tpu.memory_space<smem>>
    %c0_0 = arith.constant 0 : index
    %c0_1 = arith.constant 0 : index
    %c0_2 = arith.constant 0 : index
    %8 = vector.load %arg4[%c0_0, %c0_1, %c0_2] : memref<1x32x3xf32, #tpu.memory_space<vmem>>, vector<1x32x1xf32>
    %9 = vector.shape_cast %8 : vector<1x32x1xf32> to vector<32x1xf32>
    %c0_3 = arith.constant 0 : index
    %c0_4 = arith.constant 0 : index
    %c1_5 = arith.constant 1 : index
    %10 = vector.load %arg4[%c0_3, %c0_4, %c1_5] : memref<1x32x3xf32, #tpu.memory_space<vmem>>, vector<1x32x1xf32>
    %11 = vector.shape_cast %10 : vector<1x32x1xf32> to vector<32x1xf32>
    %c0_6 = arith.constant 0 : index
    %c0_7 = arith.constant 0 : index
    %c2_8 = arith.constant 2 : index
    %12 = vector.load %arg4[%c0_6, %c0_7, %c2_8] : memref<1x32x3xf32, #tpu.memory_space<vmem>>, vector<1x32x1xf32>
    %13 = vector.shape_cast %12 : vector<1x32x1xf32> to vector<32x1xf32>
    %14 = vector.broadcast %1 : f32 to vector<32x1xf32>
    %15 = arith.mulf %9, %14 : vector<32x1xf32>
    %16 = vector.broadcast %3 : f32 to vector<32x1xf32>
    %17 = arith.mulf %13, %16 : vector<32x1xf32>
    %18 = arith.subf %15, %17 : vector<32x1xf32>
    %19 = vector.broadcast %3 : f32 to vector<32x1xf32>
    %20 = arith.mulf %9, %19 : vector<32x1xf32>
    %21 = vector.broadcast %1 : f32 to vector<32x1xf32>
    %22 = arith.mulf %13, %21 : vector<32x1xf32>
    %23 = arith.addf %20, %22 : vector<32x1xf32>
    %24 = vector.broadcast %5 : f32 to vector<32x1xf32>
    %25 = arith.mulf %11, %24 : vector<32x1xf32>
    %26 = vector.broadcast %7 : f32 to vector<32x1xf32>
    %27 = arith.mulf %23, %26 : vector<32x1xf32>
    %28 = arith.subf %25, %27 : vector<32x1xf32>
    %29 = vector.broadcast %7 : f32 to vector<32x1xf32>
    %30 = arith.mulf %11, %29 : vector<32x1xf32>
    %31 = vector.broadcast %5 : f32 to vector<32x1xf32>
    %32 = arith.mulf %23, %31 : vector<32x1xf32>
    %33 = arith.addf %30, %32 : vector<32x1xf32>
    %cst = arith.constant dense<0x7F800000> : vector<1xf32>
    %34 = vector.multi_reduction <minimumf>, %33, %cst [0] : vector<32x1xf32> to vector<1xf32>
    %35 = vector.shape_cast %34 : vector<1xf32> to vector<1x1xf32>
    %cst_9 = arith.constant dense<0xFF800000> : vector<1xf32>
    %36 = vector.multi_reduction <maximumf>, %33, %cst_9 [0] : vector<32x1xf32> to vector<1xf32>
    %37 = vector.shape_cast %36 : vector<1xf32> to vector<1x1xf32>
    %38 = vector.broadcast %35 : vector<1x1xf32> to vector<32x1xf32>
    %39 = arith.subf %33, %38 : vector<32x1xf32>
    %40 = arith.subf %37, %35 : vector<1x1xf32>
    %cst_10 = arith.constant 9.99999997E-7 : f32
    %41 = vector.broadcast %cst_10 : f32 to vector<1x1xf32>
    %42 = arith.addf %40, %41 : vector<1x1xf32>
    %43 = vector.broadcast %42 : vector<1x1xf32> to vector<32x1xf32>
    %44 = arith.divf %39, %43 : vector<32x1xf32>
    %cst_11 = arith.constant 0.699999988 : f32
    %45 = vector.broadcast %cst_11 : f32 to vector<32x1xf32>
    %46 = arith.mulf %45, %44 : vector<32x1xf32>
    %cst_12 = arith.constant 3.000000e-01 : f32
    %47 = vector.broadcast %cst_12 : f32 to vector<32x1xf32>
    %48 = arith.addf %47, %46 : vector<32x1xf32>
    %cst_13 = arith.constant 1.250000e-01 : f32
    %49 = vector.broadcast %cst_13 : f32 to vector<32x1xf32>
    %50 = arith.subf %18, %49 : vector<32x1xf32>
    %cst_14 = arith.constant 1.000000e+00 : f32
    %51 = vector.broadcast %cst_14 : f32 to vector<32x1xf32>
    %52 = arith.addf %50, %51 : vector<32x1xf32>
    %cst_15 = arith.constant 5.000000e-01 : f32
    %53 = vector.broadcast %cst_15 : f32 to vector<32x1xf32>
    %54 = arith.mulf %52, %53 : vector<32x1xf32>
    %cst_16 = arith.constant 1.500000e+01 : f32
    %55 = vector.broadcast %cst_16 : f32 to vector<32x1xf32>
    %56 = arith.mulf %54, %55 : vector<32x1xf32>
    %57 = arith.fptosi %56 : vector<32x1xf32> to vector<32x1xi32>
    %cst_17 = arith.constant 1.250000e-01 : f32
    %58 = vector.broadcast %cst_17 : f32 to vector<32x1xf32>
    %59 = arith.addf %18, %58 : vector<32x1xf32>
    %cst_18 = arith.constant 1.000000e+00 : f32
    %60 = vector.broadcast %cst_18 : f32 to vector<32x1xf32>
    %61 = arith.addf %59, %60 : vector<32x1xf32>
    %cst_19 = arith.constant 5.000000e-01 : f32
    %62 = vector.broadcast %cst_19 : f32 to vector<32x1xf32>
    %63 = arith.mulf %61, %62 : vector<32x1xf32>
    %cst_20 = arith.constant 1.500000e+01 : f32
    %64 = vector.broadcast %cst_20 : f32 to vector<32x1xf32>
    %65 = arith.mulf %63, %64 : vector<32x1xf32>
    %66 = arith.fptosi %65 : vector<32x1xf32> to vector<32x1xi32>
    %cst_21 = arith.constant 1.250000e-01 : f32
    %67 = vector.broadcast %cst_21 : f32 to vector<32x1xf32>
    %68 = arith.subf %28, %67 : vector<32x1xf32>
    %cst_22 = arith.constant 1.000000e+00 : f32
    %69 = vector.broadcast %cst_22 : f32 to vector<32x1xf32>
    %70 = arith.addf %68, %69 : vector<32x1xf32>
    %cst_23 = arith.constant 5.000000e-01 : f32
    %71 = vector.broadcast %cst_23 : f32 to vector<32x1xf32>
    %72 = arith.mulf %70, %71 : vector<32x1xf32>
    %cst_24 = arith.constant 1.500000e+01 : f32
    %73 = vector.broadcast %cst_24 : f32 to vector<32x1xf32>
    %74 = arith.mulf %72, %73 : vector<32x1xf32>
    %75 = arith.fptosi %74 : vector<32x1xf32> to vector<32x1xi32>
    %cst_25 = arith.constant 1.250000e-01 : f32
    %76 = vector.broadcast %cst_25 : f32 to vector<32x1xf32>
    %77 = arith.addf %28, %76 : vector<32x1xf32>
    %cst_26 = arith.constant 1.000000e+00 : f32
    %78 = vector.broadcast %cst_26 : f32 to vector<32x1xf32>
    %79 = arith.addf %77, %78 : vector<32x1xf32>
    %cst_27 = arith.constant 5.000000e-01 : f32
    %80 = vector.broadcast %cst_27 : f32 to vector<32x1xf32>
    %81 = arith.mulf %79, %80 : vector<32x1xf32>
    %cst_28 = arith.constant 1.500000e+01 : f32
    %82 = vector.broadcast %cst_28 : f32 to vector<32x1xf32>
    %83 = arith.mulf %81, %82 : vector<32x1xf32>
    %84 = arith.fptosi %83 : vector<32x1xf32> to vector<32x1xi32>
    %c0_29 = arith.constant 0 : index
    %c0_30 = arith.constant 0 : index
    %85 = vector.load %arg3[%c0_29, %c0_30] : memref<2x256xi32, #tpu.memory_space<vmem>>, vector<1x256xi32>
    %c1_31 = arith.constant 1 : index
    %c0_32 = arith.constant 0 : index
    %86 = vector.load %arg3[%c1_31, %c0_32] : memref<2x256xi32, #tpu.memory_space<vmem>>, vector<1x256xi32>
    %87 = vector.broadcast %86 : vector<1x256xi32> to vector<32x256xi32>
    %88 = vector.broadcast %57 : vector<32x1xi32> to vector<32x256xi32>
    %89 = arith.cmpi sge, %87, %88 : vector<32x256xi32>
    %90 = vector.broadcast %86 : vector<1x256xi32> to vector<32x256xi32>
    %91 = vector.broadcast %66 : vector<32x1xi32> to vector<32x256xi32>
    %92 = arith.cmpi sle, %90, %91 : vector<32x256xi32>
    %93 = arith.andi %89, %92 : vector<32x256xi1>
    %94 = vector.broadcast %85 : vector<1x256xi32> to vector<32x256xi32>
    %95 = vector.broadcast %75 : vector<32x1xi32> to vector<32x256xi32>
    %96 = arith.cmpi sge, %94, %95 : vector<32x256xi32>
    %97 = arith.andi %93, %96 : vector<32x256xi1>
    %98 = vector.broadcast %85 : vector<1x256xi32> to vector<32x256xi32>
    %99 = vector.broadcast %84 : vector<32x1xi32> to vector<32x256xi32>
    %100 = arith.cmpi sle, %98, %99 : vector<32x256xi32>
    %101 = arith.andi %97, %100 : vector<32x256xi1>
    %cst_33 = arith.constant 0.000000e+00 : f32
    %102 = vector.shape_cast %48 : vector<32x1xf32> to vector<32x1xf32>
    %103 = vector.broadcast %102 : vector<32x1xf32> to vector<32x256xf32>
    %104 = vector.broadcast %cst_33 : f32 to vector<32x256xf32>
    %105 = arith.select %101, %103, %104 : vector<32x256xi1>, vector<32x256xf32>
    %cst_34 = arith.constant dense<0xFF800000> : vector<256xf32>
    %106 = vector.multi_reduction <maximumf>, %105, %cst_34 [0] : vector<32x256xf32> to vector<256xf32>
    %107 = vector.shape_cast %106 : vector<256xf32> to vector<1x256xf32>
    %c0_35 = arith.constant 0 : index
    %c0_36 = arith.constant 0 : index
    %c0_37 = arith.constant 0 : index
    %c0_38 = arith.constant 0 : index
    %108 = vector.load %arg5[%c0_35, %c0_36, %c0_37, %c0_38] : memref<1x1x1x256xf32, #tpu.memory_space<vmem>>, vector<1x1x1x256xf32>
    %109 = vector.shape_cast %108 : vector<1x1x1x256xf32> to vector<1x256xf32>
    %110 = vector.shape_cast %107 : vector<1x256xf32> to vector<1x1x1x256xf32>
    tpu.vector_store %arg5[%c0_35, %c0_36, %c0_37, %c0_38], %110 {strides = array<i32>} : memref<1x1x1x256xf32, #tpu.memory_space<vmem>>, vector<1x1x1x256xf32>,
    return
  }
  func.func @transform_0(%arg0: i32, %arg1: i32) -> (i32, i32) {
    %c0_i32 = arith.constant 0 : i32
    %c0_i32_0 = arith.constant 0 : i32
    %c0_i32_1 = arith.constant 0 : i32
    return %c0_i32, %c0_i32_0 : i32, i32
  }
  func.func @transform_1(%arg0: i32, %arg1: i32) -> (i32, i32) {
    %c0_i32 = arith.constant 0 : i32
    %c0_i32_0 = arith.constant 0 : i32
    %c0_i32_1 = arith.constant 0 : i32
    return %c0_i32, %c0_i32_0 : i32, i32
  }
  func.func @transform_2(%arg0: i32, %arg1: i32) -> (i32, i32, i32) {
    %c0_i32 = arith.constant 0 : i32
    %c0_i32_0 = arith.constant 0 : i32
    %c0_i32_1 = arith.constant 0 : i32
    return %arg0, %c0_i32, %c0_i32_0 : i32, i32, i32
  }
  func.func @transform_3(%arg0: i32, %arg1: i32) -> (i32, i32, i32, i32) {
    %c0_i32 = arith.constant 0 : i32
    %c0_i32_0 = arith.constant 0 : i32
    %c0_i32_1 = arith.constant 0 : i32
    return %arg0, %arg1, %c0_i32, %c0_i32_0 : i32, i32, i32, i32
  }
}

</mosaic_0001>

<bundles_post_ra>
// kernel: tpu_custom_call.1
= control target key start
LH: loop header
LB: loop body
LE: loop exit
PB: predicated region body
PF: predicated region fallthrough
CT: control target
= control target key end

     0   :  { %8 = vsyncpa [#allocation4], 0  ;;  %s1382_s0 = inlined_call_operand.vmem [shape: f32[6,4], index: 0, kind: input, shape index: {}]   ;;  %s1383_s1 = inlined_call_operand.vmem [shape: s32[2,256], index: 1, kind: input, shape index: {}]   ;;  %s1384_s2 = inlined_call_operand.vmem [shape: f32[2,32,3], index: 2, kind: input, shape index: {}]   ;;  %s1385_s3 = inlined_call_operand.hbm [shape: f32[2,6,1,256], index: 3, kind: output, shape index: {}]  }
   0x1   :  { %9 = vsyncpa [#allocation3], 0 }
   0x2   :  { %11 = vsyncpa [#allocation3 + $0x1], 0  ;;  %s1031_s12 = smov 0   ;;  %s1033_s13 = smov 0  }
   0x3   :  { %s1035_s14 = smov 0   ;;  %s1037_s15 = smov 0  }
   0x4   :  { %s1039_s16 = smov 0   ;;  %s1041_s17 = smov 0  }
   0x5   :  { %s1043_s18 = smov 0   ;;  %s1045_s19 = smov 0  }
   0x6 LB: > { %s737_s20 = sadd.s32 4294967295, %s1002_s19   ;;  %s738_s21 = sadd.s32 4294967294, %s1002_s19   ;;  %s1002_s19 = sphi %s1045_s19, %s17_s19   ;;  %s998_s18 = sphi %s1043_s18, %s1437_s18   ;;  %s994_s17 = sphi %s1041_s17, %s1436_s17   ;;  %s990_s16 = sphi %s1039_s16, %s1435_s16   ;;  %s986_s15 = sphi %s1037_s15, %s1434_s15   ;;  %s982_s14 = sphi %s1035_s14, %s1433_s14   ;;  %s978_s13 = sphi %s1033_s13, %s1432_s13   ;;  %s974_s12 = sphi %s1031_s12, %s1431_s12  }
   0x7   : > { %s26_s22 = sadd.s32 1, %s994_s17  ;;  %s29_s23 = sadd.s32 1, %s998_s18 }
   0x8   : > { %p27_p0 = scmp.ge.s32.totalorder %s26_s22, 6  ;;  %s106_s24 = sadd.s32 1, %s982_s14 }
   0x9   : > { %p116_p1 = scmp.ne.s32.totalorder %s982_s14, %s978_s13  ;;  %p117_p2 = scmp.eq.s32.totalorder %s737_s20, 11 }
   0xa   : > { %s1439_s22 = smov (%p27_p0, %s26_s22), 0  ;;  %s1441_s23 = smov (!%p27_p0, %s29_s23), %s998_s18 }
   0xb   : > { %s102_s25 = ssub.s32 %s994_s17, %s1439_s22  ;;  %p1083_p3 = por %p117_p2, %p116_p1 }
   0xc   : > { %p31_p4 = scmp.ge.s32.totalorder %s1441_s23, 2  ;;  %p122_p5 = scmp.ne.s32.totalorder %s978_s13, %s974_s12 }
   0xd   : > { %p123_p6 = scmp.eq.s32.totalorder %s738_s21, 11  ;;  %p739_p7 = scmp.ge.s32.totalorder %s1002_s19, 1 }
   0xe   : > { %s1443_s23 = smov (%p31_p4, %s1441_s23), 0  ;;  %p130_p9 = scmp.lt.s32.totalorder %s1002_s19, 13 }
   0xf   : > { %p1092_p8 = por %p123_p6, %p122_p5  ;;  %s101_s28 = ssub.s32 %s998_s18, %s1443_s23 }
  0x10   : > { %s103_s29 = sor.u32 %s102_s25, %s101_s28  ;;  %p1099_p10 = pnand %p739_p7, %p130_p9 }
  0x11   : > { %s1387_s27 = scalar_select %p1092_p8, 1, 0 }
  0x12   : > { %p104_p11 = scmp.eq.s32.totalorder %s103_s29, 0  ;;  %p1103_p12 = scmp.eq.s32.totalorder %s737_s20, 0 }
  0x13   : > { %p802_p13 = pneg %p1099_p10  ;;  %s143_s7 = sshll.u32 %s1382_s0, 4  ;;  %s144_s7 = int_to_ptr.vmem [resolvable:$true] %s143_s7 }
  0x14   : > { %s1113_s8 = scalar_select %p104_p11, %s982_s14, %s106_s24  }
  0x15   : > { %p803_p0 = pnand %p1103_p12, %p802_p13  ;;  %s889_s9 = scalar_lea.vmem %s144_s7, 128 }
  0x16   : > { %p890_p1 = scmp.ne.s32.totalorder %s144_s7, %s889_s9  ;;  %p897_p6 = scmp.lt.s32.totalorder %s144_s7, %s144_s7 }
  0x17   : > { %p891_p2 = pneg %p803_p0  ;;  %p898_p7 = scmp.lt.s32.totalorder %s889_s9, %s889_s9 }
  0x19   : > { %p892_p4 = pnand %p891_p2, %p890_p1  ;;  %p899_p9 = por %p898_p7, %p897_p6 }
  0x1b   : > { %p893_p5 = pneg %p892_p4 }
  0x1d   : > { %p900_p8 = pnand %p899_p9, %p893_p5 }
  0x1f   : > { %903 = shalt.err (!%p900_p8)
}
  0x20   : > { %s1004_s10 = smov [#allocation2]   ;;  %167 = sbr.rel (%p1099_p10) target bundleno = 520 (0x208), region = 32 }
  0x21   : > { %805 = dma.vmem_to_smem (!%p803_p0), %s144_s7, 128, %s1004_s10, [#allocation4]  }
  0x27   : > { %965 = dma.done.wait (%p1103_p12), [#allocation4], 128  }
  0x28   : > { %967 = vsyncadd (%p1103_p12), [#allocation4], 4294967168 }
  0x29   : > { %173 = sfence }
  0x2a   : > { %p192_p11 = scmp.lt.s32.totalorder %s990_s16, 1  ;;  %s1125_s11 = sshll.u32 %s986_s15, 7  ;;  %v1007_v31 = vmov 0   ;;  %vm317_vm0 = vcmask 15368  }
  0x2b   : > { %s198_s20 = sld [smem:[#allocation2 + %s1125_s11]]  ;;  %s1005_s30 = smov 126   ;;  %884 = vset.pattern.permute.xlu1 %v1007_v31  ;;  %883 = vset.pattern.permute.xlu0 %v1007_v31 }
  0x2c   : > { %s193_s21 = scalar_select %p192_p11, %s990_s16, 1 }
  0x2d   : > { %s199_s4 = sadd.s32 1, %s1125_s11  ;;  %s201_s6 = sadd.s32 2, %s1125_s11 }
  0x2e   : > { %s762_s24 = sshll.u32 %s193_s21, 5  ;;  %s200_s5 = sld [smem:[#allocation2 + %s199_s4]] }
  0x2f   : > { %s196_s29 = scalar_lea.vmem %s1384_s2, %s762_s24  ;;  %s202_s7 = sld [smem:[#allocation2 + %s201_s6]] }
  0x30   : > { %v1132_v0 = vld [vmem:[%s196_s29] sm:$0xff]  ;;  %v1134_v1 = vld [vmem:[%s196_s29 + $0x10] sm:$0xff]  ;;  %v1136_v3 = vld [vmem:[%s196_s29 + $0x8] sm:$0xff]  ;;  %s203_s9 = sadd.s32 3, %s1125_s11  ;;  %s1006_s10 = smov 1  }
  0x31   : > { %v209_v2 = vstv %s198_s20  ;;  %v1138_v4 = vld [vmem:[%s196_s29 + $0x18] sm:$0xff]  ;;  %s204_s20 = sld [smem:[#allocation2 + %s203_s9]]  ;;  %s189_s28 = sand.u32 1, %s978_s13  }
  0x32   : > { %v1141_v5 = vmul.f32 %v209_v2, %v1132_v0  ;;  %v1144_v6 = vmul.f32 %v209_v2, %v1134_v1  ;;  %v1151_v7 = vmul.f32 %v209_v2, %v1136_v3  ;;  %v1154_v8 = vmul.f32 %v209_v2, %v1138_v4  ;;  %s795_s29 = smul.u32 12, %s990_s16  ;;  %s758_s4 = sshll.u32 %s986_s15, 1 }
  0x33   : > { %s1010_s21 = smov [#allocation5]  }
  0x34   : > { %243 = vrot.lane.b32.xlu0 %v1141_v5, %s1005_s30  ;;  %247 = vrot.lane.b32.xlu1 %v1144_v6, %s1005_s30  ;;  %v214_v9 = vstv %s200_s5  ;;  %s648_s5 = sadd.s32 %s795_s29, %s758_s4  ;;  %s908_s24 = sshll.u32 %s1010_s21, 4  ;;  %s909_s24 = int_to_ptr.vmem [resolvable:$false] %s908_s24 }
  0x35   : > { %v215_v10 = vmul.f32 %v214_v9, %v1132_v0  ;;  %v217_v11 = vmul.f32 %v214_v9, %v1134_v1  ;;  %v1164_v12 = vstv %s202_s7  ;;  %v216_v17 = vmul.f32 %v214_v9, %v1136_v3  ;;  %s759_s6 = sshll.u32 %s648_s5, 4  ;;  %s910_s25 = scalar_lea.vmem %s909_s24, 64 }
  0x36   : > { %v218_v18 = vmul.f32 %v214_v9, %v1138_v4  ;;  %v261_v31 = vmul.f32 %v1164_v12, %v1136_v3  ;;  %s1329_s15 = scalar_lea.hbm %s1385_s3, %s759_s6 }
  0x37   : > { %v264_v27 = vstv %s204_s20  ;;  %s636_s20 = scalar_lea.sflag [#allocation3], %s189_s28 }
  0x38   : > { %245 = vrot.lane.b32.xlu0 %v1151_v7, %s1005_s30  ;;  %249 = vrot.lane.b32.xlu1 %v1154_v8, %s1005_s30  ;;  %v290_v34 = vmul.f32 %v264_v27, %v1136_v3  ;;  %v289_v35 = vmul.f32 %v264_v27, %v1132_v0  ;;  %v291_v36 = vmul.f32 %v264_v27, %v1134_v1 }
  0x39   : > { %v292_v40 = vmul.f32 %v264_v27, %v1138_v4 }
  0xa6   : > { %v244_v13 = vpop.permute.xlu0 %243  ;;  %v248_v14 = vpop.permute.xlu1 %247 }
  0xa7   : > { %v255_v15 = vadd.f32 %v244_v13, %v215_v10  ;;  %v257_v16 = vadd.f32 %v248_v14, %v217_v11 }
  0xa9   : > { %v293_v19 = vmul.f32 %v1164_v12, %v255_v15  ;;  %v295_v22 = vmul.f32 %v1164_v12, %v257_v16  ;;  %v265_v28 = vmul.f32 %v264_v27, %v255_v15  ;;  %v267_v29 = vmul.f32 %v264_v27, %v257_v16 }
  0xaa   : > { %v246_v20 = vpop.permute.xlu0 %245  ;;  %v250_v21 = vpop.permute.xlu1 %249 }
  0xab   : > { %v256_v23 = vadd.f32 %v246_v20, %v216_v17  ;;  %301 = vrot.lane.b32.xlu0 %v293_v19, %s1006_s10  ;;  %v258_v24 = vadd.f32 %v250_v21, %v218_v18 }
  0xad   : > { %v294_v25 = vmul.f32 %v1164_v12, %v256_v23  ;;  %v296_v26 = vmul.f32 %v1164_v12, %v258_v24  ;;  %v266_v30 = vmul.f32 %v264_v27, %v256_v23  ;;  %v268_v32 = vmul.f32 %v264_v27, %v258_v24 }
  0xaf   : > { %305 = vrot.lane.b32.xlu0 %v295_v22, %s1006_s10  ;;  %303 = vrot.lane.b32.xlu1 %v294_v25, %s1006_s10 }
  0xb3   : > { %223 = vrot.lane.b32.xlu0 %v215_v10, %s1005_s30  ;;  %307 = vrot.lane.b32.xlu1 %v296_v26, %s1006_s10 }
  0xb7   : > { %227 = vrot.lane.b32.xlu0 %v217_v11, %s1005_s30  ;;  %225 = vrot.lane.b32.xlu1 %v216_v17, %s1005_s30 }
  0xbb   : > { %273 = vrot.lane.b32.xlu0 %v265_v28, %s1006_s10  ;;  %229 = vrot.lane.b32.xlu1 %v218_v18, %s1005_s30  ;;  %s744_s30 = sshll.u32 %s189_s28, 1 }
  0xbc   : > { %s191_s7 = scalar_lea.vmem [#allocation5], %s744_s30 }
  0xbd   : > { %s652_s9 = sshll.u32 %s191_s7, 4  ;;  %s1331_s9 = int_to_ptr.vmem [resolvable:$true] %s652_s9 }
  0xbe   : > { %s904_s11 = scalar_lea.vmem %s1331_s9, 32  ;;  %p911_p13 = scmp.lt.s32.totalorder %s1331_s9, %s909_s24 }
  0xbf   : > { %277 = vrot.lane.b32.xlu0 %v267_v29, %s1006_s10  ;;  %275 = vrot.lane.b32.xlu1 %v266_v30, %s1006_s10  ;;  %p905_p8 = scmp.ne.s32.totalorder %s1331_s9, %s904_s11  ;;  %p912_p0 = scmp.lt.s32.totalorder %s910_s25, %s904_s11 }
  0xc1   : > { %p906_p10 = pnand %p905_p8, %p1083_p3  ;;  %p913_p1 = por %p912_p0, %p911_p13 }
  0xc3   : > { %279 = vrot.lane.b32.xlu1 %v268_v32, %s1006_s10  ;;  %p907_p12 = pneg %p906_p10 }
  0xc5   : > { %p914_p2 = pnand %p913_p1, %p907_p12 }
 0x11d   : > { %v302_v33 = vpop.permute.xlu0 %301 }
 0x11e   : > { %v1183_v41 = vadd.f32 %v302_v33, %v289_v35 }
 0x120   : > { %v318_v48 = vsel %vm317_vm0, %v1183_v41, inf  ;;  %v331_v49 = vsel %vm317_vm0, %v1183_v41, -inf }
 0x121   : > { %v304_v37 = vpop.permute.xlu1 %303  ;;  %v306_v38 = vpop.permute.xlu0 %305 }
 0x122   : > { %v1180_v39 = vadd.f32 %v304_v37, %v290_v34  ;;  %v1185_v42 = vadd.f32 %v306_v38, %v291_v36 }
 0x124   : > { %v319_v45 = vsel %vm317_vm0, %v1180_v39, inf  ;;  %v332_v46 = vsel %vm317_vm0, %v1180_v39, -inf  ;;  %v320_v50 = vsel %vm317_vm0, %v1185_v42, inf  ;;  %v333_v51 = vsel %vm317_vm0, %v1185_v42, -inf }
 0x125   : > { %v308_v43 = vpop.permute.xlu1 %307  ;;  %v224_v44 = vpop.permute.xlu0 %223  ;;  %v322_v55 = vmin.f32 %v318_v48, %v319_v45  ;;  %v335_v56 = vmax.f32 %v331_v49, %v332_v46 }
 0x126   : > { %v1189_v47 = vadd.f32 %v308_v43, %v292_v40  ;;  %v235_v54 = vsub.f32 %v1141_v5, %v224_v44 }
 0x128   : > { %v321_v52 = vsel %vm317_vm0, %v1189_v47, inf  ;;  %v334_v53 = vsel %vm317_vm0, %v1189_v47, -inf  ;;  %v748_v9 = vadd.f32 -0.125, %v235_v54 }
 0x129   : > { %v323_v57 = vmin.f32 %v320_v50, %v321_v52  ;;  %v336_v58 = vmax.f32 %v333_v51, %v334_v53  ;;  %v226_v59 = vpop.permute.xlu1 %225  ;;  %v228_v61 = vpop.permute.xlu0 %227 }
 0x12a   : > { %v236_v60 = vsub.f32 %v1151_v7, %v226_v59  ;;  %v237_v2 = vsub.f32 %v1144_v6, %v228_v61  ;;  %v367_v17 = vadd.f32 1.0, %v748_v9  ;;  %v383_v7 = vadd.f32 0.125, %v235_v54 }
 0x12b   : > { %v324_v62 = vmin.f32 %v322_v55, %v323_v57  ;;  %v337_v63 = vmax.f32 %v335_v56, %v336_v58  ;;  %v260_v6 = vmul.f32 %v1164_v12, %v1132_v0  ;;  %v262_v0 = vmul.f32 %v1164_v12, %v1134_v1 }
 0x12c   : > { %v749_v10 = vadd.f32 -0.125, %v236_v60  ;;  %v750_v5 = vadd.f32 -0.125, %v237_v2  ;;  %v384_v22 = vadd.f32 0.125, %v236_v60  ;;  %v371_v28 = vmul.f32 0.5, %v367_v17 }
 0x12d   : > { %v325_v11 = vrot.slane %v324_v62, 4  ;;  %v338_v13 = vrot.slane %v337_v63, 4  ;;  %v230_v14 = vpop.permute.xlu1 %229  ;;  %v274_v23 = vpop.permute.xlu0 %273  ;;  %v387_v32 = vadd.f32 1.0, %v383_v7  ;;  %v385_v33 = vadd.f32 0.125, %v237_v2 }
 0x12e   : > { %v368_v18 = vadd.f32 1.0, %v749_v10  ;;  %v238_v19 = vsub.f32 %v1154_v8, %v230_v14  ;;  %v369_v27 = vadd.f32 1.0, %v750_v5  ;;  %v388_v8 = vadd.f32 1.0, %v384_v22 }
 0x12f   : > { %v326_v15 = vmin.f32 %v324_v62, %v325_v11  ;;  %v339_v16 = vmax.f32 %v337_v63, %v338_v13  ;;  %v285_v38 = vsub.f32 %v260_v6, %v274_v23  ;;  %v375_v45 = vmul.f32 15.0, %v371_v28 }
 0x130   : > { %v751_v24 = vadd.f32 -0.125, %v238_v19  ;;  %v372_v29 = vmul.f32 0.5, %v368_v18  ;;  %v386_v34 = vadd.f32 0.125, %v238_v19  ;;  %v373_v40 = vmul.f32 0.5, %v369_v27 }
 0x131   : > { %v327_v20 = vrot.slane %v326_v15, 2  ;;  %v340_v21 = vrot.slane %v339_v16, 2  ;;  %v276_v35 = vpop.permute.xlu1 %275  ;;  %v278_v44 = vpop.permute.xlu0 %277  ;;  %v391_v49 = vmul.f32 0.5, %v387_v32  ;;  %v392_v50 = vmul.f32 0.5, %v388_v8 }
 0x132   : > { %v370_v30 = vadd.f32 1.0, %v751_v24  ;;  %v376_v46 = vmul.f32 15.0, %v372_v29  ;;  %v286_v48 = vsub.f32 %v261_v31, %v276_v35  ;;  %v389_v3 = vadd.f32 1.0, %v385_v33 }
 0x133   : > { %v328_v25 = vmin.f32 %v326_v15, %v327_v20  ;;  %v341_v26 = vmax.f32 %v339_v16, %v340_v21  ;;  %v390_v51 = vadd.f32 1.0, %v386_v34  ;;  %v752_v54 = vadd.f32 -0.125, %v285_v38 }
 0x134   : > { %v374_v43 = vmul.f32 0.5, %v370_v30  ;;  %v287_v55 = vsub.f32 %v262_v0, %v278_v44  ;;  %v377_v56 = vmul.f32 15.0, %v373_v40  ;;  %v263_v1 = vmul.f32 %v1164_v12, %v1138_v4 }
 0x135   : > { %v329_v36 = vrot.slane %v328_v25, 1  ;;  %v342_v37 = vrot.slane %v341_v26, 1  ;;  %v753_v58 = vadd.f32 -0.125, %v286_v48  ;;  %v280_v59 = vpop.permute.xlu1 %279  ;;  %v765_v60 = vtrunc.f32 %v376_v46 }
 0x136   : > { %v378_v57 = vmul.f32 15.0, %v374_v43  ;;  %v763_v61 = vtrunc.f32 %v375_v45  ;;  %v395_v62 = vmul.f32 15.0, %v391_v49  ;;  %v396_v63 = vmul.f32 15.0, %v392_v50 }
 0x137   : > { %v1207_v52 = vmin.f32 %v328_v25, %v329_v36  ;;  %v343_v53 = vmax.f32 %v341_v26, %v342_v37  ;;  %v393_v2 = vmul.f32 0.5, %v389_v3  ;;  %v394_v9 = vmul.f32 0.5, %v390_v51 }
 0x138   : > { %v407_v11 = vadd.f32 1.0, %v752_v54  ;;  %v754_v13 = vadd.f32 -0.125, %v287_v55  ;;  %v766_v14 = vcvt.f32.s32 %v765_v60  ;;  %v288_v15 = vsub.f32 %v263_v1, %v280_v59 }
 0x139   : > { %v348_v10 = vsub.f32 %v343_v53, %v1207_v52  ;;  %v764_v16 = vcvt.f32.s32 %v763_v61  ;;  %v769_v5 = vtrunc.f32 %v378_v57  ;;  %v767_v17 = vtrunc.f32 %v377_v56 }
 0x13a   : > { %v423_v18 = vadd.f32 0.125, %v285_v38  ;;  %v408_v19 = vadd.f32 1.0, %v753_v58  ;;  %458 = vperm.xlu1 %884, %v766_v14   ;;  %v398_v4 = vmul.f32 15.0, %v394_v9  ;;  %v397_v21 = vmul.f32 15.0, %v393_v2 }
 0x13b   : > { %455 = vperm.xlu0 %883, %v764_v16   ;;  %v770_v12 = vcvt.f32.s32 %v769_v5  ;;  %v768_v20 = vcvt.f32.s32 %v767_v17  ;;  %v411_v7 = vmul.f32 0.5, %v407_v11  ;;  %v771_v22 = vtrunc.f32 %v395_v62 }
 0x13c   : > { %v349_v23 = vadd.f32 1e-06, %v348_v10  ;;  %v409_v24 = vadd.f32 1.0, %v754_v13  ;;  %v755_v6 = vadd.f32 -0.125, %v288_v15  ;;  %v773_v25 = vtrunc.f32 %v396_v63 }
 0x13d   : > { %v427_v26 = vadd.f32 1.0, %v423_v18  ;;  %v412_v27 = vmul.f32 0.5, %v408_v19  ;;  %v425_v28 = vadd.f32 0.125, %v287_v55  ;;  %v777_v29 = vtrunc.f32 %v398_v4 }
 0x13e   : > { %461 = vperm.xlu1 %884, %v768_v20   ;;  %v415_v30 = vmul.f32 15.0, %v411_v7  ;;  %v424_v31 = vadd.f32 0.125, %v286_v48  ;;  %v772_v32 = vcvt.f32.s32 %v771_v22  ;;  %v775_v8 = vtrunc.f32 %v397_v21 }
 0x13f   : > { %464 = vperm.xlu0 %883, %v770_v12   ;;  %887 = vrcp.f32 %v349_v23  ;;  %v413_v33 = vmul.f32 0.5, %v409_v24  ;;  %v410_v34 = vadd.f32 1.0, %v755_v6  ;;  %v774_v35 = vcvt.f32.s32 %v773_v25 }
 0x140   : > { %v431_v36 = vmul.f32 0.5, %v427_v26  ;;  %v416_v37 = vmul.f32 15.0, %v412_v27  ;;  %v429_v38 = vadd.f32 1.0, %v425_v28  ;;  %v778_v0 = vcvt.f32.s32 %v777_v29 }
 0x141   : > { %v428_v40 = vadd.f32 1.0, %v424_v31  ;;  %v776_v43 = vcvt.f32.s32 %v775_v8  ;;  %v417_v44 = vmul.f32 15.0, %v413_v33  ;;  %v414_v45 = vmul.f32 0.5, %v410_v34  ;;  %v756_v33 = vld [vmem:[%s1383_s1 + $0x1] ss:$2 sm:$0x3] }
 0x142   : > { %475 = vperm.xlu1 %884, %v772_v32   ;;  %v426_v46 = vadd.f32 0.125, %v288_v15  ;;  %v779_v49 = vtrunc.f32 %v415_v30  ;;  %v435_v50 = vmul.f32 15.0, %v431_v36  ;;  %v433_v48 = vmul.f32 0.5, %v429_v38 }
 0x143   : > { %478 = vperm.xlu0 %883, %v774_v35   ;;  %v781_v3 = vtrunc.f32 %v416_v37  ;;  %v432_v51 = vmul.f32 0.5, %v428_v40  ;;  %v418_v53 = vmul.f32 15.0, %v414_v45  ;;  %v783_v56 = vtrunc.f32 %v417_v44 }
 0x144   : > { %v430_v54 = vadd.f32 1.0, %v426_v46  ;;  %v780_v55 = vcvt.f32.s32 %v779_v49  ;;  %v437_v57 = vmul.f32 15.0, %v433_v48  ;;  %v1008_v1 = vmov 1  }
 0x145   : > { %v782_v58 = vcvt.f32.s32 %v781_v3  ;;  %v787_v59 = vtrunc.f32 %v435_v50  ;;  %v344_v61 = vsub.f32 %v1183_v41, %v1207_v52  ;;  %v436_v62 = vmul.f32 15.0, %v432_v51 }
 0x146   : > { %481 = vperm.xlu1 %884, %v776_v43   ;;  %v434_v63 = vmul.f32 0.5, %v430_v54  ;;  %v784_v2 = vcvt.f32.s32 %v783_v56  ;;  %v785_v9 = vtrunc.f32 %v418_v53  ;;  %v791_v11 = vtrunc.f32 %v437_v57 }
 0x147   : > { %484 = vperm.xlu0 %883, %v778_v0   ;;  %v788_v10 = vcvt.f32.s32 %v787_v59  ;;  %v346_v14 = vsub.f32 %v1185_v42, %v1207_v52  ;;  %v789_v5 = vtrunc.f32 %v436_v62  ;;  %v345_v41 = vsub.f32 %v1180_v39, %v1207_v52  ;;  %v443_v0 = vld [vmem:[%s1383_s1] ss:$2 sm:$0x3] }
 0x148   : > { %v438_v15 = vmul.f32 15.0, %v434_v63  ;;  %v786_v16 = vcvt.f32.s32 %v785_v9  ;;  %v792_v17 = vcvt.f32.s32 %v791_v11  ;;  %v347_v22 = vsub.f32 %v1189_v47, %v1207_v52 }
 0x149   : > { %v888_v60 = vpop.eup %887  ;;  %v790_v4 = vcvt.f32.s32 %v789_v5  ;;  %v446_v29 = vlaneseq  ;;  %v1392_v46 = vmov 0  ;;  %v1394_v48 = vmov 0 }
 0x14a   : > { %885 = vset.pattern.permute.xlu1 %v1008_v1  ;;  %v351_v13 = vmul.f32 %v888_v60, %v344_v61  ;;  %v353_v19 = vmul.f32 %v888_v60, %v346_v14  ;;  %v793_v12 = vtrunc.f32 %v438_v15  ;;  %v352_v20 = vmul.f32 %v888_v60, %v345_v41 }
 0x14b   : > { %886 = vset.pattern.permute.xlu0 %v1008_v1  ;;  %511 = vperm.xlu1 %885, %v780_v55   ;;  %v354_v24 = vmul.f32 %v888_v60, %v347_v22  ;;  %v1221_v47 = vshrl.u32 %v446_v29, 7  ;;  %v1398_v53 = vmov 0  ;;  %v1400_v54 = vmov 0 }
 0x14c   : > { %514 = vperm.xlu0 %886, %v782_v58   ;;  %v355_v18 = vmul.f32 0.7, %v351_v13  ;;  %v357_v7 = vmul.f32 0.7, %v353_v19  ;;  %v794_v42 = vcvt.f32.s32 %v793_v12  ;;  %v356_v23 = vmul.f32 0.7, %v352_v20 }
 0x14d   : > { %v358_v26 = vmul.f32 0.7, %v354_v24  ;;  %v448_v8 = vsub.s32 0, %v1221_v47  ;;  %v452_v34 = vsub.s32 1, %v1221_v47  ;;  %v1402_v56 = vmov 0 }
 0x14e   : > { %v359_v21 = vadd.f32 0.3, %v355_v18  ;;  %v361_v6 = vadd.f32 0.3, %v357_v7  ;;  %v360_v25 = vadd.f32 0.3, %v356_v23 }
 0x14f   : > { %517 = vperm.xlu1 %885, %v784_v2   ;;  %v362_v39 = vadd.f32 0.3, %v358_v26  ;;  %v449_v37 = vrot.slane %v756_v33, %v448_v8  ;;  %v453_v38 = vrot.slane %v756_v33, %v452_v34  ;;  %v505_v45 = vrot.slane %v443_v0, %v448_v8 }
 0x150   : > { %539 = vperm.xlu0 %886, %v788_v10   ;;  %v509_v49 = vrot.slane %v443_v0, %v452_v34  ;;  %v1406_v58 = vmov 0  ;;  %v1410_v59 = vmov 0  ;;  %v1412_v61 = vmov 0 }
 0x151   : > { %v1415_v63 = vmov 0  ;;  %v1417_v2 = vmov 0 }
 0x153   : > { %520 = vperm.xlu1 %885, %v786_v16  }
 0x154   : > { %545 = vperm.xlu0 %886, %v792_v17  }
 0x157   : > { %542 = vperm.xlu1 %885, %v790_v4  }
 0x158   : > { %568 = vperm.xlu0 %886, %v359_v21  }
 0x15b   : > { %548 = vperm.xlu1 %885, %v794_v42  }
 0x15c   : > { %578 = vperm.xlu0 %886, %v361_v6  }
 0x15f   : > { %573 = vperm.xlu1 %885, %v360_v25  }
 0x163   : > { %583 = vperm.xlu1 %885, %v362_v39   ;;  %v1009_v39 = vmov 1966171168  }
 0x1b9   : > { %v459_v27 = vpop.permute.xlu1 %458 }
 0x1ba   : > { %v456_v28 = vpop.permute.xlu0 %455  ;;  %vm468_vm8 = vcmp.ge.s32.totalorder %v449_v37, %v459_v27  ;;  %vm469_vm11 = vcmp.ge.s32.totalorder %v453_v38, %v459_v27  ;;  %v616_v27 = vunpack.c.l.s4 %v1009_v39 }
 0x1bb   : > { %vm466_vm3 = vcmp.ge.s32.totalorder %v449_v37, %v456_v28  ;;  %vm467_vm5 = vcmp.ge.s32.totalorder %v453_v38, %v456_v28 }
 0x1bd   : > { %v462_v30 = vpop.permute.xlu1 %461 }
 0x1be   : > { %v465_v31 = vpop.permute.xlu0 %464  ;;  %vm470_vm14 = vcmp.ge.s32.totalorder %v449_v37, %v462_v30 }
 0x1c1   : > { %v476_v52 = vpop.permute.xlu1 %475 }
 0x1c2   : > { %v479_v32 = vpop.permute.xlu0 %478  ;;  %vm486_vm1 = vcmp.le.s32.totalorder %v449_v37, %v476_v52  ;;  %vm487_vm2 = vcmp.le.s32.totalorder %v453_v38, %v476_v52 }
 0x1c3   : > { %vm488_vm4 = vcmp.le.s32.totalorder %v449_v37, %v479_v32  ;;  %vm1231_vm6 = vmand %vm466_vm3, %vm486_vm1  ;;  %vm489_vm7 = vcmp.le.s32.totalorder %v453_v38, %v479_v32  ;;  %vm471_vm1 = vcmp.ge.s32.totalorder %v453_v38, %v462_v30  ;;  %v617_v32 = vunpack.c.0.s8 %v616_v27 }
 0x1c4   : > { %vm1235_vm9 = vmand %vm467_vm5, %vm487_vm2  ;;  %vm472_vm5 = vcmp.ge.s32.totalorder %v449_v37, %v465_v31 }
 0x1c5   : > { %v482_v35 = vpop.permute.xlu1 %481  ;;  %v1393_v46 = vsel %vm1235_vm9, 4294967295, %v1392_v46  ;;  %vm1239_vm12 = vmand %vm468_vm8, %vm488_vm4 }
 0x1c6   : > { %v485_v36 = vpop.permute.xlu0 %484  ;;  %vm490_vm10 = vcmp.le.s32.totalorder %v449_v37, %v482_v35  ;;  %v1395_v48 = vsel %vm1239_vm12, 4294967295, %v1394_v48  ;;  %vm491_vm13 = vcmp.le.s32.totalorder %v453_v38, %v482_v35  ;;  %vm1243_vm15 = vmand %vm469_vm11, %vm489_vm7  ;;  %vm473_vm11 = vcmp.ge.s32.totalorder %v453_v38, %v465_v31 }
 0x1c7   : > { %vm492_vm0 = vcmp.le.s32.totalorder %v449_v37, %v485_v36  ;;  %vm1247_vm2 = vmand %vm470_vm14, %vm490_vm10  ;;  %vm493_vm4 = vcmp.le.s32.totalorder %v453_v38, %v485_v36  ;;  %v620_v36 = vsub.s32 %v617_v32, %v1221_v47 }
 0x1c8   : > { %v1399_v53 = vsel %vm1247_vm2, 4294967295, %v1398_v53  ;;  %vm1251_vm9 = vmand %vm471_vm1, %vm491_vm13  ;;  %vm1408_vm1 = vnez %v1393_v46 }
 0x1c9   : > { %v1401_v54 = vsel %vm1251_vm9, 4294967295, %v1400_v54  ;;  %vm1255_vm12 = vmand %vm472_vm5, %vm492_vm0 }
 0x1ca   : > { %v512_v40 = vpop.permute.xlu1 %511  ;;  %v1403_v56 = vsel %vm1255_vm12, 4294967295, %v1402_v56  ;;  %vm1265_vm14 = vmand %vm473_vm11, %vm493_vm4  ;;  %vm1409_vm12 = vnez %v1395_v48 }
 0x1cb   : > { %v515_v43 = vpop.permute.xlu0 %514  ;;  %vm522_vm3 = vcmp.ge.s32.totalorder %v505_v45, %v512_v40  ;;  %vm523_vm8 = vcmp.ge.s32.totalorder %v509_v49, %v512_v40  ;;  %v1407_v58 = vsel %vm1265_vm14, 4294967295, %v1406_v58 }
 0x1cc   : > { %vm524_vm7 = vcmp.ge.s32.totalorder %v505_v45, %v515_v43  ;;  %vm1261_vm10 = vmand %vm1231_vm6, %vm522_vm3  ;;  %vm525_vm13 = vcmp.ge.s32.totalorder %v509_v49, %v515_v43 }
 0x1cd   : > { %vm531_vm0 = vmand %vm1408_vm1, %vm523_vm8  ;;  %vm1414_vm8 = vnez %v1399_v53 }
 0x1ce   : > { %v518_v50 = vpop.permute.xlu1 %517  ;;  %vm1273_vm9 = vmand %vm1409_vm12, %vm524_vm7 }
 0x1cf   : > { %v540_v3 = vpop.permute.xlu0 %539  ;;  %vm526_vm5 = vcmp.ge.s32.totalorder %v505_v45, %v518_v50  ;;  %v1411_v59 = vsel %vm1273_vm9, 4294967295, %v1410_v59  ;;  %vm1279_vm3 = vmand %vm1243_vm15, %vm525_vm13  ;;  %vm527_vm4 = vcmp.ge.s32.totalorder %v509_v49, %v518_v50  ;;  %vm1419_vm13 = vnez %v1401_v54 }
 0x1d0   : > { %vm550_vm2 = vcmp.le.s32.totalorder %v505_v45, %v540_v3  ;;  %vm551_vm6 = vcmp.le.s32.totalorder %v509_v49, %v540_v3  ;;  %v1413_v61 = vsel %vm1279_vm3, 4294967295, %v1412_v61  ;;  %vm534_vm1 = vmand %vm1414_vm8, %vm526_vm5  ;;  %vm1420_vm5 = vnez %v1403_v56 }
 0x1d1   : > { %vm1287_vm12 = vmand %vm1261_vm10, %vm550_vm2 }
 0x1d2   : > { %v521_v55 = vpop.permute.xlu1 %520  ;;  %v1416_v63 = vsel %vm1287_vm12, 4294967295, %v1415_v63  ;;  %vm1291_vm7 = vmand %vm531_vm0, %vm551_vm6 }
 0x1d3   : > { %v546_v57 = vpop.permute.xlu0 %545  ;;  %vm528_vm11 = vcmp.ge.s32.totalorder %v505_v45, %v521_v55  ;;  %v1418_v2 = vsel %vm1291_vm7, 4294967295, %v1417_v2  ;;  %vm535_vm3 = vmand %vm1419_vm13, %vm527_vm4  ;;  %vm529_vm9 = vcmp.ge.s32.totalorder %v509_v49, %v521_v55  ;;  %vm1425_vm7 = vnez %v1407_v58 }
 0x1d4   : > { %vm554_vm14 = vcmp.le.s32.totalorder %v505_v45, %v546_v57  ;;  %vm555_vm15 = vcmp.le.s32.totalorder %v509_v49, %v546_v57  ;;  %vm536_vm8 = vmand %vm1420_vm5, %vm528_vm11  ;;  %vm1426_vm5 = vnez %v1411_v59 }
 0x1d5   : > { %vm1299_vm10 = vmand %vm534_vm1, %vm554_vm14  ;;  %vm1427_vm14 = vnez %v1413_v61 }
 0x1d6   : > { %v543_v60 = vpop.permute.xlu1 %542  ;;  %vm1303_vm0 = vmand %vm535_vm3, %vm555_vm15  ;;  %vm1428_vm15 = vnez %v1416_v63 }
 0x1d7   : > { %v569_v62 = vpop.permute.xlu0 %568  ;;  %vm552_vm2 = vcmp.le.s32.totalorder %v505_v45, %v543_v60  ;;  %vm553_vm12 = vcmp.le.s32.totalorder %v509_v49, %v543_v60  ;;  %vm537_vm4 = vmand %vm1425_vm7, %vm529_vm9  ;;  %vm1429_vm7 = vnez %v1418_v2 }
 0x1d8   : > { %vm560_vm11 = vmand %vm1426_vm5, %vm552_vm2  ;;  %v586_v5 = vsel %vm1428_vm15, %v569_v62, 0.0  ;;  %v587_v17 = vsel %vm1429_vm7, %v569_v62, 0.0 }
 0x1d9   : > { %vm561_vm1 = vmand %vm1427_vm14, %vm553_vm12  ;;  %vm632_vm12 = vcmp.lt.s32.totalorder %v446_v29, 256 }
 0x1da   : > { %v549_v9 = vpop.permute.xlu1 %548 }
 0x1db   : > { %vm556_vm6 = vcmp.le.s32.totalorder %v505_v45, %v549_v9  ;;  %v579_v13 = vpop.permute.xlu0 %578  ;;  %vm557_vm13 = vcmp.le.s32.totalorder %v509_v49, %v549_v9 }
 0x1dc   : > { %v590_v15 = vsel %vm1299_vm10, %v579_v13, 0.0  ;;  %v591_v16 = vsel %vm1303_vm0, %v579_v13, 0.0  ;;  %vm564_vm3 = vmand %vm536_vm8, %vm556_vm6 }
 0x1dd   : > { %vm565_vm9 = vmand %vm537_vm4, %vm557_vm13  ;;  %v594_v20 = vmax.f32 %v586_v5, %v590_v15  ;;  %v603_v21 = vmax.f32 %v587_v17, %v591_v16 }
 0x1de   : > { %v574_v14 = vpop.permute.xlu1 %573 }
 0x1df   : > { %v588_v19 = vsel %vm560_vm11, %v574_v14, 0.0  ;;  %v589_v41 = vsel %vm561_vm1, %v574_v14, 0.0 }
 0x1e2   : > { %v584_v18 = vpop.permute.xlu1 %583 }
 0x1e3   : > { %v592_v4 = vsel %vm564_vm3, %v584_v18, 0.0  ;;  %v593_v12 = vsel %vm565_vm9, %v584_v18, 0.0 }
 0x1e4   : > { %v595_v7 = vmax.f32 %v588_v19, %v592_v4  ;;  %v604_v22 = vmax.f32 %v589_v41, %v593_v12 }
 0x1e6   : > { %v596_v42 = vmax.f32 %v594_v20, %v595_v7  ;;  %v605_v23 = vmax.f32 %v603_v21, %v604_v22 }
 0x1e8   : > { %v597_v24 = vrot.slane %v596_v42, 4  ;;  %v606_v6 = vrot.slane %v605_v23, 4 }
 0x1ea   : > { %v598_v25 = vmax.f32 %v596_v42, %v597_v24  ;;  %v607_v26 = vmax.f32 %v605_v23, %v606_v6 }
 0x1ec   : > { %v599_v28 = vrot.slane %v598_v25, 2  ;;  %v608_v30 = vrot.slane %v607_v26, 2 }
 0x1ee   : > { %v600_v31 = vmax.f32 %v598_v25, %v599_v28  ;;  %v609_v52 = vmax.f32 %v607_v26, %v608_v30 }
 0x1f0   : > { %v601_v8 = vrot.slane %v600_v31, 1  ;;  %v610_v33 = vrot.slane %v609_v52, 1 }
 0x1f2   : > { %v602_v34 = vmax.f32 %v600_v31, %v601_v8  ;;  %v611_v35 = vmax.f32 %v609_v52, %v610_v33 }
 0x1f4   : > { %v614_v37 = vcombine.low %v602_v34, %v611_v35 }
 0x1f6   : > { %v621_v38 = vrot.slane %v614_v37, %v620_v36 }
 0x1f8   : > { %v628_v0 = vrot.slane %v621_v38, %v620_v36 }
 0x1fa   : > { %634 = vst.msk [vmem:[%s191_s7] sm:$0x3] %vm632_vm12, %v628_v0 }
 0x1fb   : > { %917 = shalt.err (!%p914_p2)
}
 0x1fc   : > { %s918_s28 = scalar_lea.hbm %s1329_s15, 32  ;;  %s922_s4 = scalar_lea.hbm %s1385_s3, 384 }
 0x1fd   : > { %p919_p4 = scmp.ne.s32.totalorder %s1329_s15, %s918_s28  ;;  %p923_p7 = scmp.lt.u32.totalorder %s1329_s15, %s1385_s3 }
 0x1fe   : > { %p924_p9 = scmp.lt.u32.totalorder %s922_s4, %s918_s28  ;;  %p926_p8 = scmp.lt.u32.totalorder %s918_s28, %s1329_s15 }
 0x1ff   : > { %p920_p5 = pnand %p919_p4, %p1083_p3 }
 0x200   : > { %p925_p11 = por %p924_p9, %p923_p7 }
 0x201   : > { %p921_p6 = pneg %p920_p5 }
 0x202   : > { %p927_p10 = por %p926_p8, %p925_p11 }
 0x204   : > { %p928_p12 = pnand %p927_p10, %p921_p6 }
 0x206   : > { %931 = shalt.err (!%p928_p12)
}
 0x207   : > { %800 = dma.vmem_to_hbm [thread:$0]  (%p1083_p3), %s1331_s9, 32, %s1329_s15, %s636_s20  }
 0x208 PF: > { %p812_p13 = scmp.ge.s32.totalorder %s1002_s19, 2  ;;  %s664_s7 = sand.u32 1, %s974_s12  }
 0x209   : > { %p1430_p0 = scmp.ne.s32.totalorder %s1387_s27, 0  ;;  %s665_s10 = scalar_lea.sflag [#allocation3], %s664_s7 }
 0x20b   : > { %p807_p1 = pnand %p812_p13, %p1430_p0 }
 0x20d   : > { %969 = dma.done.wait (!%p807_p1), %s665_s10, 32  }
 0x20e   : > { %971 = vsyncadd (!%p807_p1), %s665_s10, 4294967264  ;;  %s17_s19 = sadd.s32 1, %s1002_s19   ;;  %s1431_s12 = smov %s978_s13 }
 0x20f   : > { %p14_p2 = scmp.ge.s32.totalorder %s17_s19, 14   ;;  %s1432_s13 = smov %s982_s14 }
 0x210   : > { %s1433_s14 = smov %s1113_s8  ;;  %s1434_s15 = smov %s994_s17 }
 0x211   : > { %s1435_s16 = smov %s998_s18  ;;  %s1436_s17 = smov %s1439_s22 }
 0x212   : > { %s1437_s18 = smov %s1443_s23  ;;  %16 = sbr.rel (!%p14_p2) target bundleno = 6 (0x6), region = 73 }
 0x219   :  { %670 = vsyncpa [#allocation3], 1 }
 0x21a   :  { %672 = vsyncpa [#allocation3 + $0x1], 1 }
 0x21b   :  { %673 = vsyncpa [#allocation4], 1 }
 0x21c   :  { %675 = vsyncpa [#allocation4 + $0x1], 1 }

</bundles_post_ra>
